<compile_context>
chip_gen: v5e
topology: v5e:2x2
jax: 0.10.0
libtpu: 0.0.40
codegen_flags: <defaults>
</compile_context>

<pallas_src>
import jax
import jax.numpy as jnp
from jax.experimental import pallas as pl
from jax.experimental.pallas import tpu as pltpu


def _round_up(x, m):
    return (x + m - 1) // m * m


def _make_bond_kernel(D, td):
    """Kernel over blocks: BondConst (2, td), U (tm, td) -> out (tm, 1)."""
    mask_d = (D % td) != 0  # last D-tile is partial -> mask padded lanes

    def kernel(bc_ref, u_ref, out_ref, acc_ref):
        j = pl.program_id(1)  # reduction (D) axis, innermost / "arbitrary"

        @pl.when(j == 0)
        def _():
            acc_ref[...] = jnp.zeros_like(acc_ref)

        u = u_ref[...].astype(jnp.float32)        # (tm, td), in-kernel upcast
        k = bc_ref[0:1, :].astype(jnp.float32)    # (1, td) -> sublane broadcast
        r0 = bc_ref[1:2, :].astype(jnp.float32)   # (1, td)
        diff = u - r0
        term = k * (diff * diff)

        if mask_d:
            lane = jax.lax.broadcasted_iota(jnp.int32, (1, td), 1)
            valid = (j * td + lane) < D
            term = jnp.where(valid, term, 0.0)

        # Cross-lane reduce over the bond axis rides the XLU (free vs HBM).
        acc_ref[...] += jnp.sum(term, axis=1, keepdims=True)

        @pl.when(j == pl.num_programs(1) - 1)
        def _():
            out_ref[...] = (0.5 * acc_ref[...]).astype(out_ref.dtype)

    return kernel


def bond_potential(U, BondConst, *, max_lane_tile=1024,
                   vmem_budget_bytes=12 * 1024 * 1024):
    """Pallas equivalent of:
        Potential = sum(BondConst[0,:] * (U - BondConst[1,:])**2, 1).reshape(n, 1) / 2
    U: (n, D) any float dtype (consumed in native layout, no transpose);
    BondConst: (2, D). Returns (n, 1) float32.
    """
    n, D = U.shape
    assert BondConst.shape == (2, D)

    # --- D (lane) tiling: full D if small, else 128-multiple tiles. ---
    td = D if D <= max_lane_tile else max_lane_tile
    d_blocks = pl.cdiv(D, td)

    # --- Batch (sublane) tile sizing against a VMEM live-set budget. ---
    # Per row of a batch tile:
    #   double-buffered U block            : 2 * td * itemsize
    #   f32 upcast temporaries (u/diff/term): ~3 * td * 4
    #   lane-padded (tm,1) out (x2) + acc  : 3 * 512
    itemsize = jnp.dtype(U.dtype).itemsize
    per_row = 2 * td * itemsize + 3 * td * 4 + 3 * 512
    tm = max((vmem_budget_bytes // per_row) // 8 * 8, 8)
    if n >= 8:
        tm = min(tm, _round_up(n, 8))
        # Megacore / pipelining: keep >= ~4 blocks on the parallel axis when
        # n is big enough (helps v7x's 2 TCs; per-step overhead stays small).
        if n >= 32 and pl.cdiv(n, tm) < 4:
            tm = max(8, (n // 4) // 8 * 8)
    else:
        tm = n  # block dim equal to the full (tiny) batch is allowed

    grid = (pl.cdiv(n, tm), d_blocks)

    out = pl.pallas_call(
        _make_bond_kernel(D, td),
        out_shape=jax.ShapeDtypeStruct((n, 1), jnp.float32),
        grid=grid,
        in_specs=[
            pl.BlockSpec((2, td), lambda i, j: (0, j)),    # BondConst (tiny)
            pl.BlockSpec((tm, td), lambda i, j: (i, j)),   # U streamed, double-buffered
        ],
        out_specs=pl.BlockSpec((tm, 1), lambda i, j: (i, 0)),  # written once per i
        scratch_shapes=[pltpu.VMEM((tm, 1), jnp.float32)],      # accumulator
        compiler_params=pltpu.CompilerParams(
            dimension_semantics=("parallel", "arbitrary"),
            vmem_limit_bytes=32 * 1024 * 1024,
        ),
    )(BondConst, U)

    return out


def _reference(U, BondConst):
    Uf = U.astype(jnp.float32)
    BCf = BondConst.astype(jnp.float32)
    n = U.shape[0]
    return (jnp.sum(BCf[0, :] * (Uf - BCf[1, :]) ** 2, axis=1).reshape(n, 1)) / 2.0


if __name__ == "__main__":
    key = jax.random.PRNGKey(0)
    k_u, k_bc, k_u2, k_u3, k_bc3 = jax.random.split(key, 5)

    # --- Test 1: small f32 batch (single block) ---
    n, D = 8, 16
    U = jax.random.normal(k_u, (n, D), dtype=jnp.float32)
    bc_k = jax.random.uniform(k_bc, (D,), minval=0.5, maxval=2.0, dtype=jnp.float32)
    bc_r0 = jnp.linspace(0.8, 1.6, D, dtype=jnp.float32)
    BondConst = jnp.stack([bc_k, bc_r0], axis=0)  # (2, D)

    out = jax.block_until_ready(bond_potential(U, BondConst))
    ref = _reference(U, BondConst)
    assert out.shape == (n, 1)
    assert jnp.allclose(out, ref, rtol=1e-5, atol=1e-5)

    # --- Test 2: bf16 input, multi-block batch grid with a partial tail block ---
    n2 = 1000
    U2 = jax.random.normal(k_u2, (n2, D), dtype=jnp.float32).astype(jnp.bfloat16)
    out2 = jax.block_until_ready(bond_potential(U2, BondConst))
    ref2 = _reference(U2, BondConst)
    assert out2.shape == (n2, 1)
    assert jnp.allclose(out2, ref2, rtol=1e-4, atol=1e-4)

    # --- Test 3: D-tiled path (d_blocks > 1, partial/masked last D tile) ---
    n3, D3 = 64, 200
    U3 = jax.random.normal(k_u3, (n3, D3), dtype=jnp.float32)
    bc3_k = jax.random.uniform(k_bc3, (D3,), minval=0.5, maxval=2.0, dtype=jnp.float32)
    bc3_r0 = jnp.linspace(0.8, 1.6, D3, dtype=jnp.float32)
    BondConst3 = jnp.stack([bc3_k, bc3_r0], axis=0)
    out3 = jax.block_until_ready(bond_potential(U3, BondConst3, max_lane_tile=128))
    ref3 = _reference(U3, BondConst3)
    assert out3.shape == (n3, 1)
    assert jnp.allclose(out3, ref3, rtol=1e-4, atol=1e-4)

    print("KERNEL_OK")
</pallas_src>

<mosaic_0001>
module attributes {stable_mosaic.version = 11 : i64} {
  func.func @kernel(%arg0: i32, %arg1: i32, %arg2: memref<2x16xf32, #tpu.memory_space<vmem>>, %arg3: memref<8x16xf32, #tpu.memory_space<vmem>>, %arg4: memref<8x1xf32, #tpu.memory_space<vmem>>, %arg5: memref<8x1xf32, #tpu.memory_space<vmem>>) attributes {dimension_semantics = [#tpu.dimension_semantics<parallel>, #tpu.dimension_semantics<arbitrary>], iteration_bounds = array<i64: 1, 1>, scalar_prefetch = 0 : i64, scratch_operands = 1 : i64, tpu.core_type = #tpu.core_type<tc>, window_params = [{transform_indices = @transform_0, window_bounds = array<i64: 2, 16>}, {transform_indices = @transform_1, window_bounds = array<i64: 8, 16>}, {transform_indices = @transform_2, window_bounds = array<i64: 8, 1>}]} {
    %c0_i32 = arith.constant 0 : i32
    %0 = arith.cmpi eq, %arg1, %c0_i32 : i32
    %1 = arith.extui %0 : i1 to i32
    %c0_i32_0 = arith.constant 0 : i32
    %2 = arith.cmpi ne, %1, %c0_i32_0 : i32
    scf.if %2 {
      %cst_11 = arith.constant 0.000000e+00 : f32
      %19 = vector.broadcast %cst_11 : f32 to vector<8x1xf32>
      %c0_12 = arith.constant 0 : index
      %c0_13 = arith.constant 0 : index
      %20 = vector.load %arg5[%c0_12, %c0_13] : memref<8x1xf32, #tpu.memory_space<vmem>>, vector<8x1xf32>
      tpu.vector_store %arg5[%c0_12, %c0_13], %19 {strides = array<i32>} : memref<8x1xf32, #tpu.memory_space<vmem>>, vector<8x1xf32>,
    } else {
    }
    %c0 = arith.constant 0 : index
    %c0_1 = arith.constant 0 : index
    %3 = vector.load %arg3[%c0, %c0_1] : memref<8x16xf32, #tpu.memory_space<vmem>>, vector<8x16xf32>
    %c0_2 = arith.constant 0 : index
    %c0_3 = arith.constant 0 : index
    %4 = vector.load %arg2[%c0_2, %c0_3] : memref<2x16xf32, #tpu.memory_space<vmem>>, vector<1x16xf32>
    %c1 = arith.constant 1 : index
    %c0_4 = arith.constant 0 : index
    %5 = vector.load %arg2[%c1, %c0_4] : memref<2x16xf32, #tpu.memory_space<vmem>>, vector<1x16xf32>
    %6 = vector.broadcast %5 : vector<1x16xf32> to vector<8x16xf32>
    %7 = arith.subf %3, %6 : vector<8x16xf32>
    %8 = arith.mulf %7, %7 : vector<8x16xf32>
    %9 = vector.broadcast %4 : vector<1x16xf32> to vector<8x16xf32>
    %10 = arith.mulf %9, %8 : vector<8x16xf32>
    %c0_5 = arith.constant 0 : index
    %c0_6 = arith.constant 0 : index
    %11 = vector.load %arg5[%c0_5, %c0_6] : memref<8x1xf32, #tpu.memory_space<vmem>>, vector<8x1xf32>
    %cst = arith.constant dense<0.000000e+00> : vector<8xf32>
    %12 = vector.multi_reduction <add>, %10, %cst [1] : vector<8x16xf32> to vector<8xf32>
    %13 = vector.shape_cast %12 : vector<8xf32> to vector<8x1xf32>
    %14 = arith.addf %11, %13 : vector<8x1xf32>
    %c0_7 = arith.constant 0 : index
    %c0_8 = arith.constant 0 : index
    %15 = vector.load %arg5[%c0_7, %c0_8] : memref<8x1xf32, #tpu.memory_space<vmem>>, vector<8x1xf32>
    tpu.vector_store %arg5[%c0_7, %c0_8], %14 {strides = array<i32>} : memref<8x1xf32, #tpu.memory_space<vmem>>, vector<8x1xf32>,
    %c0_i32_9 = arith.constant 0 : i32
    %16 = arith.cmpi eq, %arg1, %c0_i32_9 : i32
    %17 = arith.extui %16 : i1 to i32
    %c0_i32_10 = arith.constant 0 : i32
    %18 = arith.cmpi ne, %17, %c0_i32_10 : i32
    scf.if %18 {
      %c0_11 = arith.constant 0 : index
      %c0_12 = arith.constant 0 : index
      %19 = vector.load %arg5[%c0_11, %c0_12] : memref<8x1xf32, #tpu.memory_space<vmem>>, vector<8x1xf32>
      %cst_13 = arith.constant 5.000000e-01 : f32
      %20 = vector.broadcast %cst_13 : f32 to vector<8x1xf32>
      %21 = arith.mulf %20, %19 : vector<8x1xf32>
      %c0_14 = arith.constant 0 : index
      %c0_15 = arith.constant 0 : index
      %22 = vector.load %arg4[%c0_14, %c0_15] : memref<8x1xf32, #tpu.memory_space<vmem>>, vector<8x1xf32>
      tpu.vector_store %arg4[%c0_14, %c0_15], %21 {strides = array<i32>} : memref<8x1xf32, #tpu.memory_space<vmem>>, vector<8x1xf32>,
    } else {
    }
    return
  }
  func.func @transform_0(%arg0: i32, %arg1: i32) -> (i32, i32) {
    %c0_i32 = arith.constant 0 : i32
    %c0_i32_0 = arith.constant 0 : i32
    return %c0_i32, %arg1 : i32, i32
  }
  func.func @transform_1(%arg0: i32, %arg1: i32) -> (i32, i32) {
    %c0_i32 = arith.constant 0 : i32
    return %arg0, %arg1 : i32, i32
  }
  func.func @transform_2(%arg0: i32, %arg1: i32) -> (i32, i32) {
    %c0_i32 = arith.constant 0 : i32
    %c0_i32_0 = arith.constant 0 : i32
    return %arg0, %c0_i32 : i32, i32
  }
}

</mosaic_0001>

<bundles_post_ra>
// kernel: tpu_custom_call.1
= control target key start
LH: loop header
LB: loop body
LE: loop exit
PB: predicated region body
PF: predicated region fallthrough
CT: control target
= control target key end

     0   :  { %7 = vsyncpa [#allocation4], 0  ;;  %s160_s0 = inlined_call_operand.hbm [shape: f32[2,16], index: 0, kind: input, shape index: {}]   ;;  %s161_s1 = inlined_call_operand.hbm [shape: f32[8,16], index: 1, kind: input, shape index: {}]   ;;  %s162_s2 = inlined_call_operand.vmem [shape: f32[8,1], index: 2, kind: output, shape index: {}]  }
   0x1   :  { %s14_s11 = sshll.u32 %s160_s0, 4  ;;  %s15_s11 = int_to_ptr.hbm [resolvable:$true] %s14_s11 }
   0x2   :  { %8 = vsyncpa [#allocation6], 0  ;;  %s130_s12 = smov [#allocation3]   ;;  %s25_s16 = sshll.u32 %s161_s1, 4  ;;  %s26_s16 = int_to_ptr.hbm [resolvable:$true] %s25_s16 }
   0x3   :  { %s16_s13 = sshll.u32 %s130_s12, 4  ;;  %s131_s17 = smov [#allocation5]   ;;  %s17_s13 = int_to_ptr.vmem [resolvable:$true] %s16_s13 }
   0x4   :  { %19 = dma.hbm_to_vmem [thread:$0]  %s15_s11, 32, %s17_s13, [#allocation4]  }
   0x5   :  { %s27_s18 = sshll.u32 %s131_s17, 4  ;;  %s28_s18 = int_to_ptr.vmem [resolvable:$true] %s27_s18 }
   0x6   :  { %30 = dma.hbm_to_vmem [thread:$0]  %s26_s16, 128, %s28_s18, [#allocation6]  }
   0x7   :  { %126 = dma.done.wait [#allocation4], 32  }
   0x8   :  { %127 = vsyncadd [#allocation4], 4294967264 }
   0x9   :  { %128 = dma.done.wait [#allocation6], 128  }
   0xa   :  { %129 = vsyncadd [#allocation6], 4294967168  ;;  %vm43_vm0 = vcmask 7168   ;;  %v132_v0 = vmov 0.0   ;;  %v45_v1 = vld [vmem:[#allocation5] sm:$0xff]  ;;  %vm54_vm1 = vcmask 130048  }
   0xb   :  { %44 = vst.msk [vmem:[#allocation2] sm:$0xff] %vm43_vm0, %v132_v0  ;;  %v76_v2 = vld [vmem:[#allocation3 + $0x1] ss:$0 sm:$0xff]  ;;  %v77_v4 = vld [vmem:[#allocation3] ss:$0 sm:$0xff] }
   0xc   :  { %v49_v3 = vsub.f32 %v45_v1, %v76_v2 }
   0xe   :  { %v50_v5 = vmul.f32 %v49_v3, %v49_v3 }
  0x10   :  { %v52_v6 = vmul.f32 %v77_v4, %v50_v5 }
  0x12   :  { %v55_v7 = vsel %vm54_vm1, %v52_v6, 0.0  ;;  %v53_v8 = vld [vmem:[#allocation2] sm:$0xff] }
  0x13   :  { %56 = vadd.xlane.f32.xlu0 %v55_v7 }
  0x86   :  { %v57_v9 = vpop.xlane.xlu0 %56 }
  0x87   :  { %v58_v10 = vadd.f32 %v57_v9, %v53_v8 }
  0x89   :  { %60 = vst.msk [vmem:[#allocation2] sm:$0xff] %vm43_vm0, %v58_v10 }
  0x90   :  { %v64_v11 = vld [vmem:[#allocation2] sm:$0xff] }
  0x91   :  { %v65_v12 = vmul.f32 0.5, %v64_v11 }
  0x93   :  { %66 = vst.msk [vmem:[%s162_s2] sm:$0xff] %vm43_vm0, %v65_v12 }
  0x94   :  { %71 = vsyncpa [#allocation4], 1 }
  0x95   :  { %72 = vsyncpa [#allocation6], 1 }

</bundles_post_ra>
